<compile_context>
chip_gen: v7x
topology: tpu7x:2x2x1
jax: 0.10.0
libtpu: 0.0.40
codegen_flags: <defaults>
</compile_context>

<pallas_src>
import jax
import jax.numpy as jnp
import numpy as np
from jax.experimental import pallas as pl
from jax.experimental.pallas import tpu as pltpu
from jax.scipy.linalg import lu_factor, lu_solve


# ----------------------------------------------------------------------------
# Block-size selection
# ----------------------------------------------------------------------------
def _target_block_bytes():
    """Per-block HBM bytes target, gated by chip generation when queryable.

    Keeps ~4 x block (double-buffered in + out) comfortably inside the scoped
    VMEM window on every generation (v5e 16 MiB, v6e/v7x 32 MiB scoped default;
    v7x has only 64 MiB physical VMEM), while staying in the 1-4 MiB band that
    amortizes the ~0.35 us per-grid-step overhead against HBM bandwidth.
    """
    vmem = 64 << 20
    try:
        info = pltpu.get_tpu_info()
        vmem = int(getattr(info, "vmem_capacity_bytes", vmem))
    except Exception:
        pass
    return int(min(4 << 20, max(1 << 20, vmem // 32)))


def _pick_tile_hw(hw, target_lanes):
    """Lane-tile size obeying the 128-lane constraint.

    Prefer a multiple of 128 that divides hw (no ragged block); otherwise the
    full extent (small hw) or a 128-multiple with a ragged, masked last block.
    """
    if hw <= target_lanes:
        return hw                                  # full-extent block (legal)
    target_lanes = max(128, (target_lanes // 128) * 128)
    best = None
    for cand in range(128, target_lanes + 1, 128):
        if hw % cand == 0:
            best = cand
    if best is not None:
        return best
    return target_lanes                            # ragged last block


def _pick_block(N, C, HW, dtype_bytes, target_bytes):
    """Choose (bN, tile_hw) so one block is ~target_bytes of HBM traffic."""
    per_lane = C * dtype_bytes
    sample_bytes = HW * per_lane
    if sample_bytes >= target_bytes:
        # Large feature map: tile H*W, one sample per block.
        want_lanes = max(128, target_bytes // per_lane)
        return 1, _pick_tile_hw(HW, int(want_lanes))
    # Small feature map: full H*W on lanes, fold batch samples into the block.
    bN = min(N, -(-target_bytes // sample_bytes))          # ceil
    for d in range(int(bN), 0, -1):                        # prefer divisor of N
        if N % d == 0:
            if d * 2 >= bN:
                bN = d
            break
    # Keep >= 2 grid steps when possible so both v7x TensorCores get work.
    if bN >= N and N > 1:
        bN = -(-N // 2)
    return int(bN), HW


# ----------------------------------------------------------------------------
# FlowStep reverse (== module forward) with flow_coupling='noCoupling'
# ----------------------------------------------------------------------------
def flowstep_reverse(z_nchw, logdet, weight, logs, bias, *,
                     target_block_bytes=None, donate_input=False):
    """FlowStep.forward (== reverse_flow), flow_coupling='noCoupling'.

    z_nchw : (N, C, H, W)
    logdet : (N,) float32 or None
    weight : (C, C) invconv weight
    logs   : (C,) actnorm log-scale
    bias   : (C,) actnorm bias
    """
    N, C, H, W = z_nchw.shape
    HW = H * W
    pixels = HW
    dtype_bytes = jnp.dtype(z_nchw.dtype).itemsize

    if target_block_bytes is None:
        target_block_bytes = _target_block_bytes()

    # ---- parameter setup: one LU gives both W^{-1} and log|det W| ----
    lu, piv = lu_factor(weight.astype(jnp.float32))
    w_inv = lu_solve((lu, piv), jnp.eye(C, dtype=jnp.float32))
    logabsdet_w = jnp.sum(jnp.log(jnp.abs(jnp.diagonal(lu))))

    # Fold actnorm reverse scale exp(-logs) into the rows of W^{-1}:
    #   out[co, p] = exp(-logs[co]) * sum_ci Winv[co, ci] * x[ci, p]
    wsc = jnp.exp(-logs).astype(jnp.float32)[:, None] * w_inv
    bias2d = bias.reshape(C, 1).astype(jnp.float32)

    # MXU operand dtype / precision: f32 -> HIGHEST (free, HBM-bound);
    # bf16 -> feed bf16 operands directly (no per-step full-tile upcast).
    if z_nchw.dtype == jnp.float32:
        mxu_precision = jax.lax.Precision.HIGHEST
        param_dtype = jnp.float32
    else:
        mxu_precision = jax.lax.Precision.DEFAULT
        param_dtype = z_nchw.dtype
    wsc = wsc.astype(param_dtype)

    # ---- native-layout view: NCHW -> (N, C, H*W)  (reshape only) ----
    x3d = z_nchw.reshape(N, C, HW)

    bN, tile_hw = _pick_block(N, C, HW, dtype_bytes, target_block_bytes)
    grid = (pl.cdiv(N, bN), pl.cdiv(HW, tile_hw))

    # Pipelined VMEM estimate: 2 input buffers + 2 output buffers.
    block_bytes = bN * C * tile_hw * dtype_bytes
    pipelined_bytes = 4 * block_bytes
    vmem_limit = None
    if pipelined_bytes > (12 << 20):
        vmem_limit = int(min(48 << 20, pipelined_bytes + (4 << 20)))

    def kernel(x_ref, wsc_ref, bias_ref, o_ref):
        # x_ref   : (bN, C, tile_hw) -- pixels on lanes, channels on sublanes
        # wsc_ref : (C, C)           -- exp(-logs)[:,None] * W^{-1}
        # bias_ref: (C, 1)
        # InvertibleConv1x1 reverse + ActNorm2d reverse scale, fused (MXU):
        y = jnp.einsum('oc,bcp->bop', wsc_ref[...], x_ref[...],
                       preferred_element_type=jnp.float32,
                       precision=mxu_precision)
        # ActNorm2d reverse center (VPU):
        o_ref[...] = (y - bias_ref[...][None, :, :]).astype(o_ref.dtype)

    out3d = pl.pallas_call(
        kernel,
        out_shape=jax.ShapeDtypeStruct((N, C, HW), z_nchw.dtype),
        grid=grid,
        in_specs=[
            pl.BlockSpec((bN, C, tile_hw), lambda n, p: (n, 0, p)),  # x
            pl.BlockSpec((C, C), lambda n, p: (0, 0)),   # scaled W^{-1}
            pl.BlockSpec((C, 1), lambda n, p: (0, 0)),   # bias
        ],
        out_specs=pl.BlockSpec((bN, C, tile_hw), lambda n, p: (n, 0, p)),
        compiler_params=pltpu.CompilerParams(
            dimension_semantics=("parallel", "parallel"),
            vmem_limit_bytes=vmem_limit),
        input_output_aliases=({0: 0} if donate_input else {}),
    )(x3d, wsc, bias2d)

    z_out = out3d.reshape(N, C, H, W)

    # ---- logdet bookkeeping (scalar glue, matches SRFlow reverse semantics) ----
    if logdet is not None:
        dlogdet_conv = logabsdet_w * pixels      # invconv reverse
        dlogdet_act = jnp.sum(logs) * pixels     # actnorm reverse
        logdet = logdet - dlogdet_conv - dlogdet_act

    return z_out, logdet


# ----------------------------------------------------------------------------
# Pure-JAX reference mirroring the PyTorch module
# ----------------------------------------------------------------------------
def flowstep_reverse_ref(z_nchw, logdet, weight, logs, bias):
    N, C, H, W = z_nchw.shape
    pixels = H * W
    w_inv = jnp.linalg.inv(weight)
    # F.conv2d(z, W^-1.view(C,C,1,1)): out[n,co,h,w] = sum_ci Winv[co,ci] z[n,ci,h,w]
    z1 = jnp.einsum('oc,nchw->nohw', w_inv, z_nchw,
                    precision=jax.lax.Precision.HIGHEST)
    if logdet is not None:
        logdet = logdet - jnp.linalg.slogdet(weight)[1] * pixels
    # ActNorm2d reverse: _scale then _center
    z2 = z1 * jnp.exp(-logs)[None, :, None, None]
    if logdet is not None:
        logdet = logdet - jnp.sum(logs) * pixels
    z3 = z2 - bias[None, :, None, None]
    return z3, logdet


if __name__ == "__main__":
    key = jax.random.PRNGKey(0)
    kx, kw, kl, kb = jax.random.split(key, 4)

    N, C, H, W = 2, 4, 16, 16
    x = jax.random.normal(kx, (N, C, H, W), dtype=jnp.float32)

    # InvertibleConv1x1 weight: random orthogonal init (QR of a Gaussian matrix)
    weight, _ = jnp.linalg.qr(jax.random.normal(kw, (C, C), dtype=jnp.float32))
    # ActNorm2d parameters (synthetic deterministic init; nonzero so the kernel matters)
    logs = 0.1 * jax.random.normal(kl, (C,), dtype=jnp.float32)
    bias = 0.1 * jax.random.normal(kb, (C,), dtype=jnp.float32)
    logdet = jnp.zeros((N,), dtype=jnp.float32)

    z_out, logdet_out = flowstep_reverse(x, logdet, weight, logs, bias)
    jax.block_until_ready((z_out, logdet_out))

    z_ref, logdet_ref = flowstep_reverse_ref(x, logdet, weight, logs, bias)
    np.testing.assert_allclose(np.asarray(z_out), np.asarray(z_ref),
                               rtol=1e-4, atol=1e-4)
    np.testing.assert_allclose(np.asarray(logdet_out), np.asarray(logdet_ref),
                               rtol=1e-4, atol=1e-3)

    print("KERNEL_OK")
</pallas_src>

<mosaic_0001>
module attributes {stable_mosaic.version = 11 : i64} {
  func.func @kernel(%arg0: i32, %arg1: i32, %arg2: memref<1x4x256xf32, #tpu.memory_space<vmem>>, %arg3: memref<4x4xf32, #tpu.memory_space<vmem>>, %arg4: memref<4x1xf32, #tpu.memory_space<vmem>>, %arg5: memref<1x4x256xf32, #tpu.memory_space<vmem>>) attributes {dimension_semantics = [#tpu.dimension_semantics<parallel>, #tpu.dimension_semantics<parallel>], iteration_bounds = array<i64: 2, 1>, scalar_prefetch = 0 : i64, scratch_operands = 0 : i64, tpu.core_type = #tpu.core_type<tc>, window_params = [{transform_indices = @transform_0, window_bounds = array<i64: 1, 4, 256>}, {pipeline_mode = #tpu.pipeline_mode<synchronous>, transform_indices = @transform_1, window_bounds = array<i64: 4, 4>}, {pipeline_mode = #tpu.pipeline_mode<synchronous>, transform_indices = @transform_2, window_bounds = array<i64: 4, 1>}, {transform_indices = @transform_3, window_bounds = array<i64: 1, 4, 256>}]} {
    %c0 = arith.constant 0 : index
    %c0_0 = arith.constant 0 : index
    %0 = vector.load %arg3[%c0, %c0_0] : memref<4x4xf32, #tpu.memory_space<vmem>>, vector<4x4xf32>
    %c0_1 = arith.constant 0 : index
    %c0_2 = arith.constant 0 : index
    %c0_3 = arith.constant 0 : index
    %1 = vector.load %arg2[%c0_1, %c0_2, %c0_3] : memref<1x4x256xf32, #tpu.memory_space<vmem>>, vector<1x4x256xf32>
    "tpu.trace_start"() <{level = 10 : i32, message = "oc,bcp->bop"}> : () -> ()
    %cst = arith.constant dense<0.000000e+00> : vector<1x256x4xf32>
    %2 = tpu.matmul %1, %0, %cst {dimension_numbers = #tpu.dot_dimension_numbers<[1], [1], [0, 2], [0], [0, 0, 0, 2, 1, 0], [], []>, precision = #tpu.contract_precision<fp32>} : vector<1x4x256xf32>, vector<4x4xf32>, vector<1x256x4xf32> -> vector<1x256x4xf32>
    %3 = tpu.transpose %2, [0, 2, 1] : vector<1x256x4xf32> -> vector<1x4x256xf32>
    "tpu.trace_stop"() : () -> ()
    %c0_4 = arith.constant 0 : index
    %c0_5 = arith.constant 0 : index
    %4 = vector.load %arg4[%c0_4, %c0_5] : memref<4x1xf32, #tpu.memory_space<vmem>>, vector<4x1xf32>
    %5 = vector.shape_cast %4 : vector<4x1xf32> to vector<1x4x1xf32>
    %6 = vector.broadcast %5 : vector<1x4x1xf32> to vector<1x4x256xf32>
    %7 = arith.subf %3, %6 : vector<1x4x256xf32>
    %c0_6 = arith.constant 0 : index
    %c0_7 = arith.constant 0 : index
    %c0_8 = arith.constant 0 : index
    %8 = vector.load %arg5[%c0_6, %c0_7, %c0_8] : memref<1x4x256xf32, #tpu.memory_space<vmem>>, vector<1x4x256xf32>
    tpu.vector_store %arg5[%c0_6, %c0_7, %c0_8], %7 {strides = array<i32>} : memref<1x4x256xf32, #tpu.memory_space<vmem>>, vector<1x4x256xf32>,
    return
  }
  func.func @transform_0(%arg0: i32, %arg1: i32) -> (i32, i32, i32) {
    %c0_i32 = arith.constant 0 : i32
    %c0_i32_0 = arith.constant 0 : i32
    return %arg0, %c0_i32, %arg1 : i32, i32, i32
  }
  func.func @transform_1(%arg0: i32, %arg1: i32) -> (i32, i32) {
    %c0_i32 = arith.constant 0 : i32
    %c0_i32_0 = arith.constant 0 : i32
    %c0_i32_1 = arith.constant 0 : i32
    return %c0_i32, %c0_i32_0 : i32, i32
  }
  func.func @transform_2(%arg0: i32, %arg1: i32) -> (i32, i32) {
    %c0_i32 = arith.constant 0 : i32
    %c0_i32_0 = arith.constant 0 : i32
    %c0_i32_1 = arith.constant 0 : i32
    return %c0_i32, %c0_i32_0 : i32, i32
  }
  func.func @transform_3(%arg0: i32, %arg1: i32) -> (i32, i32, i32) {
    %c0_i32 = arith.constant 0 : i32
    %c0_i32_0 = arith.constant 0 : i32
    return %arg0, %c0_i32, %arg1 : i32, i32, i32
  }
}

</mosaic_0001>

<bundles_post_ra>
// kernel: tpu_custom_call.1
= control target key start
LH: loop header
LB: loop body
LE: loop exit
PB: predicated region body
PF: predicated region fallthrough
CT: control target
= control target key end

     0   :  { %8 = vsyncpa [#allocation3], 0  ;;  %s3797_s0 = inlined_call_operand.hbm [shape: f32[2,4,256], index: 0, kind: input, shape index: {}]   ;;  %s3798_s1 = inlined_call_operand.vmem [shape: f32[4,4], index: 1, kind: input, shape index: {}]   ;;  %s3799_s2 = inlined_call_operand.vmem [shape: f32[4,1], index: 2, kind: input, shape index: {}]   ;;  %s3800_s3 = inlined_call_operand.hbm [shape: f32[2,4,256], index: 3, kind: output, shape index: {}]  }
   0x1   :  { %10 = vsyncpa [#allocation3 + $0x1], 0 }
   0x2   :  { %11 = vsyncpa [#allocation4], 0 }
   0x3   :  { %13 = vsyncpa [#allocation4 + $0x1], 0  ;;  %s3212_s12 = smov 0   ;;  %s3214_s13 = smov 0  }
   0x4   :  { %s3216_s14 = smov 0   ;;  %s3218_s15 = smov 0  }
   0x5   :  { %s3220_s16 = smov 0   ;;  %s3222_s17 = smov 0  }
   0x6 LB: > { %s2333_s18 = sadd.s32 4294967295, %s3187_s17   ;;  %s2334_s19 = sadd.s32 4294967294, %s3187_s17   ;;  %s3187_s17 = sphi %s3222_s17, %s19_s17   ;;  %s3183_s16 = sphi %s3220_s16, %s3849_s16   ;;  %s3179_s15 = sphi %s3218_s15, %s3848_s15   ;;  %s3175_s14 = sphi %s3216_s14, %s3847_s14   ;;  %s3171_s13 = sphi %s3214_s13, %s3846_s13   ;;  %s3167_s12 = sphi %s3212_s12, %s3845_s12  }
   0x7   : > { %s31_s20 = sadd.s32 1, %s3183_s16  ;;  %s40_s21 = sadd.s32 1, %s3175_s14 }
   0x8   : > { %p33_p0 = scmp.ge.s32.totalorder %s31_s20, 2  ;;  %p47_p1 = scmp.ne.s32.totalorder %s3175_s14, %s3171_s13 }
   0x9   : > { %p48_p2 = scmp.eq.s32.totalorder %s3187_s17, 0  ;;  %p53_p3 = scmp.ne.s32.totalorder %s3171_s13, %s3167_s12 }
   0xa   : > { %s3851_s20 = smov (%p33_p0, %s31_s20), 0  ;;  %p54_p5 = scmp.eq.s32.totalorder %s2333_s18, 0 }
   0xb   : > { %p3253_p4 = por %p48_p2, %p47_p1  ;;  %s35_s23 = ssub.s32 %s3183_s16, %s3851_s20 }
   0xc   : > { %p121_p6 = scmp.eq.s32.totalorder %s2333_s18, 1  ;;  %p38_p7 = scmp.eq.s32.totalorder %s35_s23, 0 }
   0xd   : > { %p3259_p8 = por %p54_p5, %p53_p3  ;;  %p127_p10 = scmp.eq.s32.totalorder %s2334_s19, 1 }
   0xe   : > { %p3263_p9 = por %p121_p6, %p47_p1  ;;  %p3020_p13 = scmp.lt.s32.totalorder %s3187_s17, 2 }
   0xf   : > { %s3268_s26 = scalar_select %p38_p7, %s3175_s14, %s40_s21  }
  0x10   : > { %s3815_s25 = scalar_select %p3263_p9, 1, 0 }
  0x11   : > { %p3270_p11 = por %p127_p10, %p53_p3  ;;  %s153_s28 = sand.u32 1, %s3175_s14  }
  0x12   : > { %s2337_s29 = sshll.u32 %s153_s28, 3  ;;  %s2348_s30 = sshll.u32 %s3183_s16, 7 }
  0x13   : > { %s3816_s27 = scalar_select %p3270_p11, 1, 0 }
  0x14   : > { %s3281_s6 = scalar_lea.hbm %s3797_s0, %s2348_s30  ;;  %s157_s7 = scalar_lea.vmem [#allocation2], %s2337_s29 }
  0x15   : > { %s167_s8 = sshll.u32 %s157_s7, 4  ;;  %p3287_p0 = pnand %p3020_p13, %p3253_p4  ;;  %s3283_s8 = int_to_ptr.vmem [resolvable:$true] %s167_s8 }
  0x16   : > { %s154_s10 = scalar_lea.sflag [#allocation3], %s153_s28  ;;  %s3075_s11 = scalar_lea.hbm %s3281_s6, 128 }
  0x17   : > { %p3076_p3 = scmp.ne.s32.totalorder %s3281_s6, %s3075_s11  ;;  %p3077_p5 = pneg %p3287_p0 }
  0x18   : > { %s3080_s21 = scalar_lea.hbm %s3797_s0, 256  ;;  %p3081_p4 = scmp.lt.u32.totalorder %s3281_s6, %s3797_s0 }
  0x19   : > { %p3078_p6 = pnand %p3077_p5, %p3076_p3  ;;  %p3082_p10 = scmp.lt.u32.totalorder %s3080_s21, %s3075_s11 }
  0x1a   : > { %p3084_p12 = scmp.lt.u32.totalorder %s3075_s11, %s3281_s6 }
  0x1b   : > { %p3079_p7 = pneg %p3078_p6  ;;  %p3083_p13 = por %p3082_p10, %p3081_p4 }
  0x1d   : > { %p3085_p1 = por %p3084_p12, %p3083_p13 }
  0x1f   : > { %p3086_p2 = pnand %p3085_p1, %p3079_p7 }
  0x21   : > { %3089 = shalt.err (!%p3086_p2)
}
  0x22   : > { %s3090_s28 = scalar_lea.vmem %s3283_s8, 128  ;;  %s3189_s29 = smov [#allocation2]  }
  0x23   : > { %p3091_p3 = scmp.ne.s32.totalorder %s3283_s8, %s3090_s28  ;;  %s3095_s30 = sshll.u32 %s3189_s29, 4  ;;  %s3096_s30 = int_to_ptr.vmem [resolvable:$false] %s3095_s30 }
  0x24   : > { %s3097_s4 = scalar_lea.vmem %s3096_s30, 256  ;;  %p3098_p9 = scmp.lt.s32.totalorder %s3283_s8, %s3096_s30 }
  0x25   : > { %p3093_p6 = pnand %p3091_p3, %p3077_p5  ;;  %p3099_p4 = scmp.lt.s32.totalorder %s3097_s4, %s3090_s28 }
  0x27   : > { %p3094_p11 = pneg %p3093_p6  ;;  %p3100_p10 = por %p3099_p4, %p3098_p9 }
  0x29   : > { %p3101_p12 = pnand %p3100_p10, %p3094_p11 }
  0x2b   : > { %3104 = shalt.err (!%p3101_p12)
}
  0x2c   : > { %3015 = dma.hbm_to_vmem [thread:$0]  (!%p3287_p0), %s3281_s6, 128, %s3283_s8, %s154_s10  }
  0x2d   : > { %p3818_p1 = scmp.lt.s32.totalorder %s3187_s17, 3  ;;  %p3819_p2 = scmp.ge.s32.totalorder %s3187_s17, 1 }
  0x2f   : > { %p173_p5 = pnand %p3819_p2, %p3818_p1 }
  0x31   : > { %176 = sbr.rel (%p173_p5) target bundleno = 845 (0x34d), region = 32 }
  0x38   : > { %s3323_s5 = sand.u32 1, %s3171_s13  }
  0x39   : > { %s2341_s7 = sshll.u32 %s3323_s5, 3  ;;  %s179_s11 = scalar_lea.sflag [#allocation3], %s3323_s5 }
  0x3a   : > { %s182_s9 = scalar_lea.vmem [#allocation2], %s2341_s7 }
  0x3b   : > { %3158 = dma.done.wait (%p3259_p8), %s179_s11, 128  }
  0x3c   : > { %3160 = vsyncadd (%p3259_p8), %s179_s11, 4294967168  ;;  %v208_v0 = vld [vmem:[%s182_s9] sm:$0xff]  ;;  %vm276_vm0 = vcmask 31744   ;;  %s2349_s18 = sshll.u32 %s3179_s15, 7  ;;  %s204_s19 = scalar_lea.vmem [#allocation5], %s2341_s7 }
  0x3d   : > { %212 = vxpose.xlu0.b32.start.end [1/1] (short) %v208_v0, 128  ;;  %v207_v1 = vld [vmem:[%s3798_s1] sm:$0xf]  ;;  %v210_v4 = vcombine.high %v208_v0, %v208_v0  ;;  %s2249_s21 = sshll.u32 %s204_s19, 4  ;;  %s3748_s28 = scalar_lea.hbm %s3800_s3, %s2349_s18  ;;  %s3750_s21 = int_to_ptr.vmem [resolvable:$true] %s2249_s21 }
  0x3e   : > { %v374_v2 = vsel %vm276_vm0, %v207_v1, 0  ;;  %s2233_s29 = scalar_lea.sflag [#allocation4], %s3323_s5  ;;  %s3105_s30 = scalar_lea.vmem %s3750_s21, 128 }
  0x3f   : > { %v3337_v3 = vand.u32 4294901760, %v374_v2  ;;  %p3106_p8 = scmp.ne.s32.totalorder %s3750_s21, %s3105_s30  ;;  %p3842_p9 = scmp.ne.s32.totalorder %s3815_s25, 0 }
  0x40   : > { %s3191_s15 = smov [#allocation5]  }
  0x41   : > { %2698 = vmatprep.subr.mxu0 %v3337_v3  ;;  %2548 = vmatprep.subr.mxu1 %v3337_v3  ;;  %v3344_v5 = vsub.f32 %v374_v2, %v3337_v3  ;;  %p3107_p11 = pnand %p3106_p8, %p3842_p9  ;;  %s3109_s4 = sshll.u32 %s3191_s15, 4  ;;  %s3110_s4 = int_to_ptr.vmem [resolvable:$false] %s3109_s4 }
  0x42   : > { %2699 = vmatpush3.xpose.msra.mxu0 %v3337_v3  ;;  %2549 = vmatpush3.xpose.msra.mxu1 %v3337_v3  ;;  %s3111_s7 = scalar_lea.vmem %s3110_s4, 256  ;;  %p3112_p7 = scmp.lt.s32.totalorder %s3750_s21, %s3110_s4 }
  0x43   : > { %v765_v6 = vand.u32 4294901760, %v3344_v5  ;;  %p3108_p0 = pneg %p3107_p11  ;;  %p3113_p13 = scmp.lt.s32.totalorder %s3111_s7, %s3105_s30 }
  0x45   : > { %v766_v7 = vsub.f32 %v3344_v5, %v765_v6  ;;  %2748 = vmatprep.subr.mxu0 %v765_v6  ;;  %p3114_p3 = por %p3113_p13, %p3112_p7 }
  0x47   : > { %v767_v8 = vand.u32 4294901760, %v766_v7  ;;  %p3115_p6 = pnand %p3114_p3, %p3108_p0 }
  0x49   : > { %2598 = vmatprep.subr.mxu1 %v767_v8 }
  0x7a   : > { %244 = vxpose.xlu0.b32.start.end [1/1] (short) %v210_v4, 128 }
  0xbd   : > { %v228_v9 = vpop.trf.xlu0 }
  0xbe   : > { %v278_v10 = vsel %vm276_vm0, %v228_v9, 0 }
  0xbf   : > { %v3349_v11 = vand.u32 4294901760, %v278_v10 }
  0xc1   : > { %v3352_v12 = vsub.f32 %v278_v10, %v3349_v11  ;;  %v229_v13 = vpop.trf.xlu0 }
  0xc2   : > { %v281_v14 = vsel %vm276_vm0, %v229_v13, 0 }
  0xc3   : > { %v3355_v15 = vand.u32 4294901760, %v281_v14  ;;  %v444_v16 = vand.u32 4294901760, %v3352_v12 }
  0xc5   : > { %v3359_v17 = vsub.f32 %v281_v14, %v3355_v15  ;;  %2700 = vmatprep.mubr.f32.mxu0 %v444_v16  ;;  %v230_v18 = vpop.trf.xlu0  ;;  %v445_v19 = vsub.f32 %v3352_v12, %v444_v16 }
  0xc6   : > { %v284_v20 = vsel %vm276_vm0, %v230_v18, 0 }
  0xc7   : > { %v3363_v21 = vand.u32 4294901760, %v284_v20  ;;  %v446_v22 = vand.u32 4294901760, %v445_v19  ;;  %v454_v23 = vand.u32 4294901760, %v3359_v17 }
  0xc9   : > { %v3367_v24 = vsub.f32 %v284_v20, %v3363_v21  ;;  %2550 = vmatprep.mubr.f32.mxu1 %v446_v22  ;;  %v231_v25 = vpop.trf.xlu0  ;;  %2701 = vmatmul.mubr.f32.vlgmr.msra.gmra.mrb[0].mxu0 %v454_v23  ;;  %v455_v26 = vsub.f32 %v3359_v17, %v454_v23 }
  0xca   : > { %v287_v27 = vsel %vm276_vm0, %v231_v25, 0  ;;  %2749 = vmatpush3.xpose.msra.mxu0 %v765_v6 }
  0xcb   : > { %v3371_v28 = vand.u32 4294901760, %v287_v27  ;;  %v456_v29 = vand.u32 4294901760, %v455_v26  ;;  %v464_v30 = vand.u32 4294901760, %v3367_v24  ;;  %2798 = vmatprep.subr.mxu0 %v3337_v3 }
  0xcd   : > { %v3376_v31 = vsub.f32 %v287_v27, %v3371_v28  ;;  %v232_v32 = vpop.trf.xlu0  ;;  %2551 = vmatmul.mubr.f32.vlgmr.msra.gmra.mrb[0].mxu1 %v456_v29  ;;  %2703 = vmatprep.mubr.f32.mxu0 %v464_v30  ;;  %v465_v33 = vsub.f32 %v3367_v24, %v464_v30 }
  0xce   : > { %v290_v34 = vsel %vm276_vm0, %v232_v32, 0  ;;  %2599 = vmatpush3.xpose.msra.mxu1 %v767_v8 }
  0xcf   : > { %v3380_v35 = vand.u32 4294901760, %v290_v34  ;;  %v466_v36 = vand.u32 4294901760, %v465_v33  ;;  %v474_v37 = vand.u32 4294901760, %v3376_v31  ;;  %2648 = vmatprep.subr.mxu1 %v3344_v5 }
  0xd1   : > { %v3385_v38 = vsub.f32 %v290_v34, %v3380_v35  ;;  %v233_v39 = vpop.trf.xlu0  ;;  %2553 = vmatprep.mubr.f32.mxu1 %v466_v36  ;;  %2704 = vmatmul.mubr.f32.gmra.mrb[2].mxu0 %v474_v37  ;;  %v475_v40 = vsub.f32 %v3376_v31, %v474_v37 }
  0xd2   : > { %v293_v41 = vsel %vm276_vm0, %v233_v39, 0 }
  0xd3   : > { %v3389_v42 = vand.u32 4294901760, %v293_v41  ;;  %v476_v43 = vand.u32 4294901760, %v475_v40  ;;  %v484_v44 = vand.u32 4294901760, %v3385_v38 }
  0xd5   : > { %v3393_v45 = vsub.f32 %v293_v41, %v3389_v42  ;;  %v234_v46 = vpop.trf.xlu0  ;;  %2554 = vmatmul.mubr.f32.gmra.mrb[2].mxu1 %v476_v43  ;;  %2706 = vmatprep.mubr.f32.mxu0 %v484_v44  ;;  %v485_v47 = vsub.f32 %v3385_v38, %v484_v44 }
  0xd6   : > { %v296_v48 = vsel %vm276_vm0, %v234_v46, 0 }
  0xd7   : > { %v3397_v49 = vand.u32 4294901760, %v296_v48  ;;  %v486_v50 = vand.u32 4294901760, %v485_v47  ;;  %v494_v51 = vand.u32 4294901760, %v3393_v45 }
  0xd9   : > { %v3401_v52 = vsub.f32 %v296_v48, %v3397_v49  ;;  %v235_v53 = vpop.trf.xlu0  ;;  %2556 = vmatprep.mubr.f32.mxu1 %v486_v50  ;;  %2707 = vmatmul.mubr.f32.gmra.mrb[4].mxu0 %v494_v51  ;;  %v495_v54 = vsub.f32 %v3393_v45, %v494_v51 }
  0xda   : > { %v299_v55 = vsel %vm276_vm0, %v235_v53, 0 }
  0xdb   : > { %v3405_v56 = vand.u32 4294901760, %v299_v55  ;;  %v496_v57 = vand.u32 4294901760, %v495_v54  ;;  %v504_v58 = vand.u32 4294901760, %v3401_v52 }
  0xdd   : > { %v3409_v59 = vsub.f32 %v299_v55, %v3405_v56  ;;  %v236_v60 = vpop.trf.xlu0  ;;  %2557 = vmatmul.mubr.f32.gmra.mrb[4].mxu1 %v496_v57  ;;  %2709 = vmatprep.mubr.f32.mxu0 %v504_v58  ;;  %v505_v61 = vsub.f32 %v3401_v52, %v504_v58 }
  0xde   : > { %v302_v62 = vsel %vm276_vm0, %v236_v60, 0 }
  0xdf   : > { %v3413_v63 = vand.u32 4294901760, %v302_v62  ;;  %v506_v0 = vand.u32 4294901760, %v505_v61  ;;  %v514_v1 = vand.u32 4294901760, %v3409_v59 }
  0xe1   : > { %v3417_v2 = vsub.f32 %v302_v62, %v3413_v63  ;;  %v237_v4 = vpop.trf.xlu0  ;;  %2559 = vmatprep.mubr.f32.mxu1 %v506_v0  ;;  %2710 = vmatmul.mubr.f32.gmra.mrb[6].mxu0 %v514_v1  ;;  %v515_v6 = vsub.f32 %v3409_v59, %v514_v1 }
  0xe2   : > { %v305_v7 = vsel %vm276_vm0, %v237_v4, 0 }
  0xe3   : > { %v3421_v8 = vand.u32 4294901760, %v305_v7  ;;  %v516_v9 = vand.u32 4294901760, %v515_v6  ;;  %v524_v10 = vand.u32 4294901760, %v3417_v2 }
  0xe5   : > { %v3425_v13 = vsub.f32 %v305_v7, %v3421_v8  ;;  %v238_v14 = vpop.trf.xlu0  ;;  %2560 = vmatmul.mubr.f32.gmra.mrb[6].mxu1 %v516_v9  ;;  %2712 = vmatprep.mubr.f32.mxu0 %v524_v10  ;;  %v525_v16 = vsub.f32 %v3417_v2, %v524_v10 }
  0xe6   : > { %v308_v18 = vsel %vm276_vm0, %v238_v14, 0 }
  0xe7   : > { %v3429_v19 = vand.u32 4294901760, %v308_v18  ;;  %v526_v20 = vand.u32 4294901760, %v525_v16  ;;  %v534_v22 = vand.u32 4294901760, %v3425_v13 }
  0xe9   : > { %v3433_v23 = vsub.f32 %v308_v18, %v3429_v19  ;;  %v239_v25 = vpop.trf.xlu0  ;;  %2562 = vmatprep.mubr.f32.mxu1 %v526_v20  ;;  %2713 = vmatmul.mubr.f32.gmra.mrb[8].mxu0 %v534_v22  ;;  %v535_v26 = vsub.f32 %v3425_v13, %v534_v22 }
  0xea   : > { %v311_v27 = vsel %vm276_vm0, %v239_v25, 0 }
  0xeb   : > { %v3437_v29 = vand.u32 4294901760, %v311_v27  ;;  %v536_v30 = vand.u32 4294901760, %v535_v26  ;;  %v544_v32 = vand.u32 4294901760, %v3433_v23 }
  0xed   : > { %v3441_v33 = vsub.f32 %v311_v27, %v3437_v29  ;;  %v240_v34 = vpop.trf.xlu0  ;;  %2563 = vmatmul.mubr.f32.gmra.mrb[8].mxu1 %v536_v30  ;;  %2715 = vmatprep.mubr.f32.mxu0 %v544_v32  ;;  %v545_v36 = vsub.f32 %v3433_v23, %v544_v32 }
  0xee   : > { %v314_v37 = vsel %vm276_vm0, %v240_v34, 0 }
  0xef   : > { %v3445_v39 = vand.u32 4294901760, %v314_v37  ;;  %v546_v40 = vand.u32 4294901760, %v545_v36  ;;  %v554_v41 = vand.u32 4294901760, %v3441_v33 }
  0xf1   : > { %v3449_v43 = vsub.f32 %v314_v37, %v3445_v39  ;;  %v241_v44 = vpop.trf.xlu0  ;;  %2565 = vmatprep.mubr.f32.mxu1 %v546_v40  ;;  %2716 = vmatmul.mubr.f32.gmra.mrb[10].mxu0 %v554_v41  ;;  %v555_v46 = vsub.f32 %v3441_v33, %v554_v41 }
  0xf2   : > { %v317_v47 = vsel %vm276_vm0, %v241_v44, 0 }
  0xf3   : > { %v3453_v48 = vand.u32 4294901760, %v317_v47  ;;  %v556_v50 = vand.u32 4294901760, %v555_v46  ;;  %v564_v51 = vand.u32 4294901760, %v3449_v43 }
  0xf5   : > { %v3457_v53 = vsub.f32 %v317_v47, %v3453_v48  ;;  %v242_v54 = vpop.trf.xlu0  ;;  %2566 = vmatmul.mubr.f32.gmra.mrb[10].mxu1 %v556_v50  ;;  %2718 = vmatprep.mubr.f32.mxu0 %v564_v51  ;;  %v565_v55 = vsub.f32 %v3449_v43, %v564_v51 }
  0xf6   : > { %v320_v57 = vsel %vm276_vm0, %v242_v54, 0 }
  0xf7   : > { %v3461_v58 = vand.u32 4294901760, %v320_v57  ;;  %v566_v60 = vand.u32 4294901760, %v565_v55  ;;  %v574_v61 = vand.u32 4294901760, %v3457_v53 }
  0xf9   : > { %v3465_v62 = vsub.f32 %v320_v57, %v3461_v58  ;;  %v243_v0 = vpop.trf.xlu0  ;;  %2568 = vmatprep.mubr.f32.mxu1 %v566_v60  ;;  %2719 = vmatmul.mubr.f32.gmra.mrb[12].mxu0 %v574_v61  ;;  %v575_v1 = vsub.f32 %v3457_v53, %v574_v61 }
  0xfa   : > { %v323_v4 = vsel %vm276_vm0, %v243_v0, 0 }
  0xfb   : > { %v3469_v6 = vand.u32 4294901760, %v323_v4  ;;  %v576_v7 = vand.u32 4294901760, %v575_v1  ;;  %v584_v9 = vand.u32 4294901760, %v3465_v62 }
  0xfd   : > { %v3473_v10 = vsub.f32 %v323_v4, %v3469_v6  ;;  %v260_v14 = vpop.trf.xlu0  ;;  %2569 = vmatmul.mubr.f32.gmra.mrb[12].mxu1 %v576_v7  ;;  %2721 = vmatprep.mubr.f32.mxu0 %v584_v9  ;;  %v585_v16 = vsub.f32 %v3465_v62, %v584_v9 }
  0xfe   : > { %v326_v18 = vsel %vm276_vm0, %v260_v14, 0 }
  0xff   : > { %v3477_v20 = vand.u32 4294901760, %v326_v18  ;;  %v586_v22 = vand.u32 4294901760, %v585_v16  ;;  %v594_v25 = vand.u32 4294901760, %v3473_v10 }
 0x101   : > { %v3481_v26 = vsub.f32 %v326_v18, %v3477_v20  ;;  %v261_v27 = vpop.trf.xlu0  ;;  %2571 = vmatprep.mubr.f32.mxu1 %v586_v22  ;;  %2722 = vmatmul.mubr.f32.gmra.mrb[14].mxu0 %v594_v25  ;;  %v595_v30 = vsub.f32 %v3473_v10, %v594_v25 }
 0x102   : > { %v329_v32 = vsel %vm276_vm0, %v261_v27, 0 }
 0x103   : > { %v3485_v34 = vand.u32 4294901760, %v329_v32  ;;  %v596_v36 = vand.u32 4294901760, %v595_v30  ;;  %v604_v37 = vand.u32 4294901760, %v3481_v26 }
 0x105   : > { %v3489_v40 = vsub.f32 %v329_v32, %v3485_v34  ;;  %v262_v41 = vpop.trf.xlu0  ;;  %2572 = vmatmul.mubr.f32.gmra.mrb[14].mxu1 %v596_v36  ;;  %2724 = vmatprep.mubr.f32.mxu0 %v604_v37  ;;  %v605_v44 = vsub.f32 %v3481_v26, %v604_v37 }
 0x106   : > { %v332_v46 = vsel %vm276_vm0, %v262_v41, 0 }
 0x107   : > { %v3493_v47 = vand.u32 4294901760, %v332_v46  ;;  %v606_v50 = vand.u32 4294901760, %v605_v44  ;;  %v614_v51 = vand.u32 4294901760, %v3489_v40 }
 0x109   : > { %v3497_v54 = vsub.f32 %v332_v46, %v3493_v47  ;;  %v263_v55 = vpop.trf.xlu0  ;;  %2574 = vmatprep.mubr.f32.mxu1 %v606_v50  ;;  %2725 = vmatmul.mubr.f32.gmra.mrb[16].mxu0 %v614_v51  ;;  %v615_v57 = vsub.f32 %v3489_v40, %v614_v51 }
 0x10a   : > { %v335_v60 = vsel %vm276_vm0, %v263_v55, 0 }
 0x10b   : > { %3820 = vst [vmem:[#allocation8_spill] sm:$0xff] %v3497_v54  ;;  %v3501_v61 = vand.u32 4294901760, %v335_v60  ;;  %v616_v0 = vand.u32 4294901760, %v615_v57  ;;  %v624_v1 = vand.u32 4294901760, %v3497_v54 }
 0x10d   : > { %v3505_v4 = vsub.f32 %v335_v60, %v3501_v61  ;;  %v264_v7 = vpop.trf.xlu0  ;;  %2575 = vmatmul.mubr.f32.gmra.mrb[16].mxu1 %v616_v0  ;;  %2727 = vmatprep.mubr.f32.mxu0 %v624_v1  ;;  %v625_v9 = vsub.f32 %v3497_v54, %v624_v1 }
 0x10e   : > { %v338_v14 = vsel %vm276_vm0, %v264_v7, 0 }
 0x10f   : > { %3821 = vst [vmem:[#allocation9_spill] sm:$0xff] %v3505_v4  ;;  %v3509_v16 = vand.u32 4294901760, %v338_v14  ;;  %v626_v18 = vand.u32 4294901760, %v625_v9  ;;  %v634_v22 = vand.u32 4294901760, %v3505_v4 }
 0x111   : > { %v3513_v25 = vsub.f32 %v338_v14, %v3509_v16  ;;  %v265_v27 = vpop.trf.xlu0  ;;  %2577 = vmatprep.mubr.f32.mxu1 %v626_v18  ;;  %2728 = vmatmul.mubr.f32.gmra.mrb[18].mxu0 %v634_v22  ;;  %v635_v30 = vsub.f32 %v3505_v4, %v634_v22 }
 0x112   : > { %v341_v32 = vsel %vm276_vm0, %v265_v27, 0 }
 0x113   : > { %3822 = vst [vmem:[#allocation10_spill] sm:$0xff] %v3513_v25  ;;  %v3517_v36 = vand.u32 4294901760, %v341_v32  ;;  %v636_v37 = vand.u32 4294901760, %v635_v30  ;;  %v644_v41 = vand.u32 4294901760, %v3513_v25 }
 0x115   : > { %v3521_v44 = vsub.f32 %v341_v32, %v3517_v36  ;;  %v266_v46 = vpop.trf.xlu0  ;;  %2578 = vmatmul.mubr.f32.gmra.mrb[18].mxu1 %v636_v37  ;;  %2730 = vmatprep.mubr.f32.mxu0 %v644_v41  ;;  %v645_v50 = vsub.f32 %v3513_v25, %v644_v41 }
 0x116   : > { %v344_v51 = vsel %vm276_vm0, %v266_v46, 0 }
 0x117   : > { %3823 = vst [vmem:[#allocation11_spill] sm:$0xff] %v3521_v44  ;;  %v3525_v55 = vand.u32 4294901760, %v344_v51  ;;  %v646_v57 = vand.u32 4294901760, %v645_v50  ;;  %v654_v60 = vand.u32 4294901760, %v3521_v44 }
 0x119   : > { %v3529_v0 = vsub.f32 %v344_v51, %v3525_v55  ;;  %v267_v1 = vpop.trf.xlu0  ;;  %2580 = vmatprep.mubr.f32.mxu1 %v646_v57  ;;  %2731 = vmatmul.mubr.f32.gmra.mrb[20].mxu0 %v654_v60  ;;  %v655_v7 = vsub.f32 %v3521_v44, %v654_v60 }
 0x11a   : > { %v347_v9 = vsel %vm276_vm0, %v267_v1, 0 }
 0x11b   : > { %3824 = vst [vmem:[#allocation12_spill] sm:$0xff] %v3529_v0  ;;  %v3533_v14 = vand.u32 4294901760, %v347_v9  ;;  %v656_v18 = vand.u32 4294901760, %v655_v7  ;;  %v664_v22 = vand.u32 4294901760, %v3529_v0 }
 0x11d   : > { %v3537_v27 = vsub.f32 %v347_v9, %v3533_v14  ;;  %v268_v30 = vpop.trf.xlu0  ;;  %2581 = vmatmul.mubr.f32.gmra.mrb[20].mxu1 %v656_v18  ;;  %2733 = vmatprep.mubr.f32.mxu0 %v664_v22  ;;  %v665_v32 = vsub.f32 %v3529_v0, %v664_v22 }
 0x11e   : > { %v350_v37 = vsel %vm276_vm0, %v268_v30, 0 }
 0x11f   : > { %3825 = vst [vmem:[#allocation13_spill] sm:$0xff] %v3537_v27  ;;  %v3541_v41 = vand.u32 4294901760, %v350_v37  ;;  %v666_v46 = vand.u32 4294901760, %v665_v32  ;;  %v674_v50 = vand.u32 4294901760, %v3537_v27 }
 0x121   : > { %v3545_v51 = vsub.f32 %v350_v37, %v3541_v41  ;;  %v269_v57 = vpop.trf.xlu0  ;;  %2583 = vmatprep.mubr.f32.mxu1 %v666_v46  ;;  %2734 = vmatmul.mubr.f32.gmra.mrb[22].mxu0 %v674_v50  ;;  %v675_v60 = vsub.f32 %v3537_v27, %v674_v50 }
 0x122   : > { %v353_v1 = vsel %vm276_vm0, %v269_v57, 0 }
 0x123   : > { %3826 = vst [vmem:[#allocation14_spill] sm:$0xff] %v3545_v51  ;;  %v3549_v7 = vand.u32 4294901760, %v353_v1  ;;  %v676_v9 = vand.u32 4294901760, %v675_v60  ;;  %v684_v18 = vand.u32 4294901760, %v3545_v51 }
 0x125   : > { %v3553_v22 = vsub.f32 %v353_v1, %v3549_v7  ;;  %v270_v30 = vpop.trf.xlu0  ;;  %2584 = vmatmul.mubr.f32.gmra.mrb[22].mxu1 %v676_v9  ;;  %2736 = vmatprep.mubr.f32.mxu0 %v684_v18  ;;  %v685_v32 = vsub.f32 %v3545_v51, %v684_v18 }
 0x126   : > { %v356_v37 = vsel %vm276_vm0, %v270_v30, 0 }
 0x127   : > { %3827 = vst [vmem:[#allocation15_spill] sm:$0xff] %v3553_v22  ;;  %v3557_v46 = vand.u32 4294901760, %v356_v37  ;;  %v686_v50 = vand.u32 4294901760, %v685_v32  ;;  %v694_v57 = vand.u32 4294901760, %v3553_v22 }
 0x129   : > { %v3561_v27 = vsub.f32 %v356_v37, %v3557_v46  ;;  %v271_v60 = vpop.trf.xlu0  ;;  %2586 = vmatprep.mubr.f32.mxu1 %v686_v50  ;;  %2737 = vmatmul.mubr.f32.gmra.mrb[24].mxu0 %v694_v57  ;;  %v695_v1 = vsub.f32 %v3553_v22, %v694_v57 }
 0x12a   : > { %v359_v9 = vsel %vm276_vm0, %v271_v60, 0 }
 0x12b   : > { %3828 = vst [vmem:[#allocation16_spill] sm:$0xff] %v3561_v27  ;;  %v3565_v0 = vand.u32 4294901760, %v359_v9  ;;  %v696_v18 = vand.u32 4294901760, %v695_v1  ;;  %v704_v30 = vand.u32 4294901760, %v3561_v27 }
 0x12d   : > { %v3569_v51 = vsub.f32 %v359_v9, %v3565_v0  ;;  %v272_v32 = vpop.trf.xlu0  ;;  %2587 = vmatmul.mubr.f32.gmra.mrb[24].mxu1 %v696_v18  ;;  %2739 = vmatprep.mubr.f32.mxu0 %v704_v30  ;;  %v705_v37 = vsub.f32 %v3561_v27, %v704_v30 }
 0x12e   : > { %v362_v50 = vsel %vm276_vm0, %v272_v32, 0 }
 0x12f   : > { %3829 = vst [vmem:[#allocation17_spill] sm:$0xff] %v3569_v51  ;;  %v3573_v44 = vand.u32 4294901760, %v362_v50  ;;  %v706_v57 = vand.u32 4294901760, %v705_v37  ;;  %v714_v60 = vand.u32 4294901760, %v3569_v51 }
 0x131   : > { %v3577_v22 = vsub.f32 %v362_v50, %v3573_v44  ;;  %v273_v1 = vpop.trf.xlu0  ;;  %2589 = vmatprep.mubr.f32.mxu1 %v706_v57  ;;  %2740 = vmatmul.mubr.f32.gmra.mrb[26].mxu0 %v714_v60  ;;  %v715_v9 = vsub.f32 %v3569_v51, %v714_v60 }
 0x132   : > { %v365_v18 = vsel %vm276_vm0, %v273_v1, 0 }
 0x133   : > { %3830 = vst [vmem:[#allocation18_spill] sm:$0xff] %v3577_v22  ;;  %v3581_v25 = vand.u32 4294901760, %v365_v18  ;;  %v716_v30 = vand.u32 4294901760, %v715_v9  ;;  %v724_v32 = vand.u32 4294901760, %v3577_v22 }
 0x135   : > { %v3585_v27 = vsub.f32 %v365_v18, %v3581_v25  ;;  %v274_v37 = vpop.trf.xlu0  ;;  %2590 = vmatmul.mubr.f32.gmra.mrb[26].mxu1 %v716_v30  ;;  %2742 = vmatprep.mubr.f32.mxu0 %v724_v32  ;;  %v725_v50 = vsub.f32 %v3577_v22, %v724_v32 }
 0x136   : > { %v368_v57 = vsel %vm276_vm0, %v274_v37, 0 }
 0x137   : > { %v3589_v4 = vand.u32 4294901760, %v368_v57  ;;  %v726_v60 = vand.u32 4294901760, %v725_v50  ;;  %v734_v1 = vand.u32 4294901760, %v3585_v27 }
 0x139   : > { %v3593_v51 = vsub.f32 %v368_v57, %v3589_v4  ;;  %v275_v9 = vpop.trf.xlu0  ;;  %2592 = vmatprep.mubr.f32.mxu1 %v726_v60  ;;  %2743 = vmatmul.mubr.f32.gmra.mrb[28].mxu0 %v734_v1  ;;  %v735_v18 = vsub.f32 %v3585_v27, %v734_v1 }
 0x13a   : > { %v371_v30 = vsel %vm276_vm0, %v275_v9, 0 }
 0x13b   : > { %v3597_v54 = vand.u32 4294901760, %v371_v30  ;;  %v736_v32 = vand.u32 4294901760, %v735_v18  ;;  %v744_v37 = vand.u32 4294901760, %v3593_v51 }
 0x13d   : > { %v3601_v22 = vsub.f32 %v371_v30, %v3597_v54  ;;  %2593 = vmatmul.mubr.f32.gmra.mrb[28].mxu1 %v736_v32  ;;  %2745 = vmatprep.mubr.f32.mxu0 %v744_v37  ;;  %v745_v50 = vsub.f32 %v3593_v51, %v744_v37 }
 0x13f   : > { %v746_v57 = vand.u32 4294901760, %v745_v50  ;;  %v754_v60 = vand.u32 4294901760, %v3601_v22 }
 0x141   : > { %2595 = vmatprep.mubr.f32.mxu1 %v746_v57  ;;  %2746 = vmatmul.mubr.f32.gmra.mrb[30].mxu0 %v754_v60  ;;  %v755_v1 = vsub.f32 %v3601_v22, %v754_v60 }
 0x142   : > { %2750 = vmatprep.mubr.f32.mxu0 %v3349_v11 }
 0x143   : > { %v756_v9 = vand.u32 4294901760, %v755_v1 }
 0x145   : > { %2596 = vmatmul.mubr.f32.gmra.mrb[30].mxu1 %v756_v9  ;;  %2751 = vmatmul.mubr.f32.vlgmr.msra.gmra.mrb[0].mxu0 %v3355_v15 }
 0x146   : > { %2600 = vmatprep.mubr.f32.mxu1 %v3349_v11  ;;  %2753 = vmatprep.mubr.f32.mxu0 %v3363_v21 }
 0x147   : > { %2799 = vmatpush3.xpose.msra.mxu0 %v3337_v3  ;;  %v3831_v3 = vld [vmem:[#allocation8_spill] sm:$0xff] }
 0x149   : > { %2601 = vmatmul.mubr.f32.vlgmr.msra.gmra.mrb[0].mxu1 %v3355_v15  ;;  %2754 = vmatmul.mubr.f32.gmra.mrb[2].mxu0 %v3371_v28 }
 0x14a   : > { %2649 = vmatpush3.xpose.msra.mxu1 %v3344_v5  ;;  %2603 = vmatprep.mubr.f32.mxu1 %v3363_v21  ;;  %v3832_v5 = vld [vmem:[#allocation9_spill] sm:$0xff] }
 0x14b   : > { %2756 = vmatprep.mubr.f32.mxu0 %v3380_v35 }
 0x14d   : > { %2604 = vmatmul.mubr.f32.gmra.mrb[2].mxu1 %v3371_v28  ;;  %2757 = vmatmul.mubr.f32.gmra.mrb[4].mxu0 %v3389_v42 }
 0x14e   : > { %2606 = vmatprep.mubr.f32.mxu1 %v3380_v35  ;;  %2759 = vmatprep.mubr.f32.mxu0 %v3397_v49 }
 0x151   : > { %2607 = vmatmul.mubr.f32.gmra.mrb[4].mxu1 %v3389_v42  ;;  %2760 = vmatmul.mubr.f32.gmra.mrb[6].mxu0 %v3405_v56 }
 0x152   : > { %2609 = vmatprep.mubr.f32.mxu1 %v3397_v49  ;;  %2762 = vmatprep.mubr.f32.mxu0 %v3413_v63 }
 0x155   : > { %2610 = vmatmul.mubr.f32.gmra.mrb[6].mxu1 %v3405_v56  ;;  %2763 = vmatmul.mubr.f32.gmra.mrb[8].mxu0 %v3421_v8 }
 0x156   : > { %2612 = vmatprep.mubr.f32.mxu1 %v3413_v63  ;;  %2765 = vmatprep.mubr.f32.mxu0 %v3429_v19 }
 0x159   : > { %2613 = vmatmul.mubr.f32.gmra.mrb[8].mxu1 %v3421_v8  ;;  %2766 = vmatmul.mubr.f32.gmra.mrb[10].mxu0 %v3437_v29 }
 0x15a   : > { %2615 = vmatprep.mubr.f32.mxu1 %v3429_v19  ;;  %2768 = vmatprep.mubr.f32.mxu0 %v3445_v39 }
 0x15d   : > { %2616 = vmatmul.mubr.f32.gmra.mrb[10].mxu1 %v3437_v29  ;;  %2769 = vmatmul.mubr.f32.gmra.mrb[12].mxu0 %v3453_v48 }
 0x15e   : > { %2618 = vmatprep.mubr.f32.mxu1 %v3445_v39  ;;  %2771 = vmatprep.mubr.f32.mxu0 %v3461_v58 }
 0x161   : > { %2619 = vmatmul.mubr.f32.gmra.mrb[12].mxu1 %v3453_v48  ;;  %2772 = vmatmul.mubr.f32.gmra.mrb[14].mxu0 %v3469_v6 }
 0x162   : > { %2621 = vmatprep.mubr.f32.mxu1 %v3461_v58  ;;  %2774 = vmatprep.mubr.f32.mxu0 %v3477_v20 }
 0x165   : > { %2622 = vmatmul.mubr.f32.gmra.mrb[14].mxu1 %v3469_v6  ;;  %2775 = vmatmul.mubr.f32.gmra.mrb[16].mxu0 %v3485_v34 }
 0x166   : > { %2624 = vmatprep.mubr.f32.mxu1 %v3477_v20  ;;  %2777 = vmatprep.mubr.f32.mxu0 %v3493_v47 }
 0x169   : > { %2625 = vmatmul.mubr.f32.gmra.mrb[16].mxu1 %v3485_v34  ;;  %2778 = vmatmul.mubr.f32.gmra.mrb[18].mxu0 %v3501_v61 }
 0x16a   : > { %2627 = vmatprep.mubr.f32.mxu1 %v3493_v47  ;;  %2780 = vmatprep.mubr.f32.mxu0 %v3509_v16 }
 0x16d   : > { %2628 = vmatmul.mubr.f32.gmra.mrb[18].mxu1 %v3501_v61  ;;  %2781 = vmatmul.mubr.f32.gmra.mrb[20].mxu0 %v3517_v36 }
 0x16e   : > { %2630 = vmatprep.mubr.f32.mxu1 %v3509_v16  ;;  %2783 = vmatprep.mubr.f32.mxu0 %v3525_v55 }
 0x171   : > { %2631 = vmatmul.mubr.f32.gmra.mrb[20].mxu1 %v3517_v36  ;;  %2784 = vmatmul.mubr.f32.gmra.mrb[22].mxu0 %v3533_v14 }
 0x172   : > { %2633 = vmatprep.mubr.f32.mxu1 %v3525_v55  ;;  %2786 = vmatprep.mubr.f32.mxu0 %v3541_v41 }
 0x175   : > { %2634 = vmatmul.mubr.f32.gmra.mrb[22].mxu1 %v3533_v14  ;;  %2787 = vmatmul.mubr.f32.gmra.mrb[24].mxu0 %v3549_v7 }
 0x176   : > { %2636 = vmatprep.mubr.f32.mxu1 %v3541_v41  ;;  %2789 = vmatprep.mubr.f32.mxu0 %v3557_v46 }
 0x179   : > { %2637 = vmatmul.mubr.f32.gmra.mrb[24].mxu1 %v3549_v7  ;;  %2790 = vmatmul.mubr.f32.gmra.mrb[26].mxu0 %v3565_v0 }
 0x17a   : > { %2639 = vmatprep.mubr.f32.mxu1 %v3557_v46  ;;  %2792 = vmatprep.mubr.f32.mxu0 %v3573_v44 }
 0x17d   : > { %2640 = vmatmul.mubr.f32.gmra.mrb[26].mxu1 %v3565_v0  ;;  %2793 = vmatmul.mubr.f32.gmra.mrb[28].mxu0 %v3581_v25 }
 0x17e   : > { %2642 = vmatprep.mubr.f32.mxu1 %v3573_v44  ;;  %2795 = vmatprep.mubr.f32.mxu0 %v3589_v4 }
 0x181   : > { %2643 = vmatmul.mubr.f32.gmra.mrb[28].mxu1 %v3581_v25  ;;  %2796 = vmatmul.mubr.f32.gmra.mrb[30].mxu0 %v3597_v54 }
 0x182   : > { %2645 = vmatprep.mubr.f32.mxu1 %v3589_v4  ;;  %2800 = vmatprep.mubr.f32.mxu0 %v3349_v11  ;;  %v3833_v11 = vld [vmem:[#allocation10_spill] sm:$0xff] }
 0x185   : > { %2646 = vmatmul.mubr.f32.gmra.mrb[30].mxu1 %v3597_v54  ;;  %2801 = vmatmul.mubr.f32.vlgmr.msra.gmra.mrb[0].mxu0 %v3355_v15  ;;  %v3835_v15 = vld [vmem:[#allocation12_spill] sm:$0xff] }
 0x186   : > { %2650 = vmatprep.mubr.f32.mxu1 %v3352_v12  ;;  %2803 = vmatprep.mubr.f32.mxu0 %v3363_v21  ;;  %v3834_v12 = vld [vmem:[#allocation11_spill] sm:$0xff]  ;;  %v3837_v21 = vld [vmem:[#allocation14_spill] sm:$0xff] }
 0x189   : > { %2651 = vmatmul.mubr.f32.vlgmr.msra.gmra.mrb[0].mxu1 %v3359_v17  ;;  %2804 = vmatmul.mubr.f32.gmra.mrb[2].mxu0 %v3371_v28  ;;  %v3836_v17 = vld [vmem:[#allocation13_spill] sm:$0xff]  ;;  %v3839_v28 = vld [vmem:[#allocation16_spill] sm:$0xff] }
 0x18a   : > { %2653 = vmatprep.mubr.f32.mxu1 %v3367_v24  ;;  %2806 = vmatprep.mubr.f32.mxu0 %v3380_v35  ;;  %v3838_v24 = vld [vmem:[#allocation15_spill] sm:$0xff]  ;;  %v3841_v35 = vld [vmem:[#allocation18_spill] sm:$0xff] }
 0x18d   : > { %2654 = vmatmul.mubr.f32.gmra.mrb[2].mxu1 %v3376_v31  ;;  %2807 = vmatmul.mubr.f32.gmra.mrb[4].mxu0 %v3389_v42  ;;  %v3840_v31 = vld [vmem:[#allocation17_spill] sm:$0xff] }
 0x18e   : > { %2656 = vmatprep.mubr.f32.mxu1 %v3385_v38  ;;  %2809 = vmatprep.mubr.f32.mxu0 %v3397_v49 }
 0x191   : > { %2657 = vmatmul.mubr.f32.gmra.mrb[4].mxu1 %v3393_v45  ;;  %2810 = vmatmul.mubr.f32.gmra.mrb[6].mxu0 %v3405_v56 }
 0x192   : > { %2659 = vmatprep.mubr.f32.mxu1 %v3401_v52  ;;  %2812 = vmatprep.mubr.f32.mxu0 %v3413_v63 }
 0x195   : > { %2660 = vmatmul.mubr.f32.gmra.mrb[6].mxu1 %v3409_v59  ;;  %2813 = vmatmul.mubr.f32.gmra.mrb[8].mxu0 %v3421_v8 }
 0x196   : > { %2662 = vmatprep.mubr.f32.mxu1 %v3417_v2  ;;  %2815 = vmatprep.mubr.f32.mxu0 %v3429_v19 }
 0x199   : > { %2663 = vmatmul.mubr.f32.gmra.mrb[8].mxu1 %v3425_v13  ;;  %2816 = vmatmul.mubr.f32.gmra.mrb[10].mxu0 %v3437_v29 }
 0x19a   : > { %2665 = vmatprep.mubr.f32.mxu1 %v3433_v23  ;;  %2818 = vmatprep.mubr.f32.mxu0 %v3445_v39 }
 0x19d   : > { %2666 = vmatmul.mubr.f32.gmra.mrb[10].mxu1 %v3441_v33  ;;  %2819 = vmatmul.mubr.f32.gmra.mrb[12].mxu0 %v3453_v48 }
 0x19e   : > { %2668 = vmatprep.mubr.f32.mxu1 %v3449_v43  ;;  %2821 = vmatprep.mubr.f32.mxu0 %v3461_v58 }
 0x1a1   : > { %2669 = vmatmul.mubr.f32.gmra.mrb[12].mxu1 %v3457_v53  ;;  %2822 = vmatmul.mubr.f32.gmra.mrb[14].mxu0 %v3469_v6 }
 0x1a2   : > { %2671 = vmatprep.mubr.f32.mxu1 %v3465_v62  ;;  %2824 = vmatprep.mubr.f32.mxu0 %v3477_v20 }
 0x1a5   : > { %2672 = vmatmul.mubr.f32.gmra.mrb[14].mxu1 %v3473_v10  ;;  %2825 = vmatmul.mubr.f32.gmra.mrb[16].mxu0 %v3485_v34 }
 0x1a6   : > { %2674 = vmatprep.mubr.f32.mxu1 %v3481_v26  ;;  %2827 = vmatprep.mubr.f32.mxu0 %v3493_v47 }
 0x1a9   : > { %2675 = vmatmul.mubr.f32.gmra.mrb[16].mxu1 %v3489_v40  ;;  %2828 = vmatmul.mubr.f32.gmra.mrb[18].mxu0 %v3501_v61 }
 0x1aa   : > { %2677 = vmatprep.mubr.f32.mxu1 %v3831_v3  ;;  %2830 = vmatprep.mubr.f32.mxu0 %v3509_v16 }
 0x1ad   : > { %2678 = vmatmul.mubr.f32.gmra.mrb[18].mxu1 %v3832_v5  ;;  %2831 = vmatmul.mubr.f32.gmra.mrb[20].mxu0 %v3517_v36 }
 0x1ae   : > { %2680 = vmatprep.mubr.f32.mxu1 %v3833_v11  ;;  %2833 = vmatprep.mubr.f32.mxu0 %v3525_v55 }
 0x1b1   : > { %2681 = vmatmul.mubr.f32.gmra.mrb[20].mxu1 %v3834_v12  ;;  %2834 = vmatmul.mubr.f32.gmra.mrb[22].mxu0 %v3533_v14 }
 0x1b2   : > { %2683 = vmatprep.mubr.f32.mxu1 %v3835_v15  ;;  %2836 = vmatprep.mubr.f32.mxu0 %v3541_v41 }
 0x1b5   : > { %2684 = vmatmul.mubr.f32.gmra.mrb[22].mxu1 %v3836_v17  ;;  %2837 = vmatmul.mubr.f32.gmra.mrb[24].mxu0 %v3549_v7 }
 0x1b6   : > { %2686 = vmatprep.mubr.f32.mxu1 %v3837_v21  ;;  %2839 = vmatprep.mubr.f32.mxu0 %v3557_v46 }
 0x1b9   : > { %2687 = vmatmul.mubr.f32.gmra.mrb[24].mxu1 %v3838_v24  ;;  %2840 = vmatmul.mubr.f32.gmra.mrb[26].mxu0 %v3565_v0 }
 0x1ba   : > { %2689 = vmatprep.mubr.f32.mxu1 %v3839_v28  ;;  %2842 = vmatprep.mubr.f32.mxu0 %v3573_v44 }
 0x1bd   : > { %2690 = vmatmul.mubr.f32.gmra.mrb[26].mxu1 %v3840_v31  ;;  %2843 = vmatmul.mubr.f32.gmra.mrb[28].mxu0 %v3581_v25 }
 0x1be   : > { %2692 = vmatprep.mubr.f32.mxu1 %v3841_v35  ;;  %2845 = vmatprep.mubr.f32.mxu0 %v3589_v4 }
 0x1c1   : > { %2693 = vmatmul.mubr.f32.gmra.mrb[28].mxu1 %v3585_v27  ;;  %2846 = vmatmul.mubr.f32.gmra.mrb[30].mxu0 %v3597_v54 }
 0x1c2   : > { %2695 = vmatprep.mubr.f32.mxu1 %v3593_v51 }
 0x1c5   : > { %2696 = vmatmul.mubr.f32.gmra.mrb[30].mxu1 %v3601_v22 }
 0x258   : > { %v2802_v38 = vpop.f32.mrb[0].mxu0 }
 0x259   : > { %v1965_v42 = vpop.f32.mrb[1].mxu0 }
 0x25c   : > { %v2652_v45 = vpop.f32.mrb[0].mxu1  ;;  %v2805_v49 = vpop.f32.mrb[2].mxu0 }
 0x25d   : > { %v2848_v52 = vadd.f32 %v2802_v38, %v2652_v45  ;;  %v1094_v56 = vpop.f32.mrb[1].mxu1  ;;  %v1977_v59 = vpop.f32.mrb[3].mxu0 }
 0x25e   : > { %v2849_v63 = vadd.f32 %v1965_v42, %v1094_v56 }
 0x260   : > { %v2808_v2 = vpop.f32.mrb[4].mxu0  ;;  %2155 = vxpose.xlu1.b32.start [1/16] (narrow) %v2849_v63, 8  ;;  %v2655_v8 = vpop.f32.mrb[2].mxu1 }
 0x261   : > { %v2850_v13 = vadd.f32 %v2805_v49, %v2655_v8  ;;  %v1108_v19 = vpop.f32.mrb[3].mxu1  ;;  %v1989_v23 = vpop.f32.mrb[5].mxu0 }
 0x262   : > { %v2851_v29 = vadd.f32 %v1977_v59, %v1108_v19 }
 0x264   : > { %v2811_v33 = vpop.f32.mrb[6].mxu0  ;;  %2156 = vxpose.xlu1.b32.cont [2/16] (narrow) %v2848_v52, 8  ;;  %v2658_v39 = vpop.f32.mrb[4].mxu1 }
 0x265   : > { %v2852_v43 = vadd.f32 %v2808_v2, %v2658_v39  ;;  %v1122_v48 = vpop.f32.mrb[5].mxu1  ;;  %v2001_v53 = vpop.f32.mrb[7].mxu0 }
 0x266   : > { %v2853_v58 = vadd.f32 %v1989_v23, %v1122_v48 }
 0x268   : > { %v2814_v62 = vpop.f32.mrb[8].mxu0  ;;  %2157 = vxpose.xlu1.b32.cont [3/16] (narrow) %v2851_v29, 8  ;;  %v2661_v6 = vpop.f32.mrb[6].mxu1 }
 0x269   : > { %v2854_v10 = vadd.f32 %v2811_v33, %v2661_v6  ;;  %v1136_v20 = vpop.f32.mrb[7].mxu1  ;;  %v2013_v26 = vpop.f32.mrb[9].mxu0 }
 0x26a   : > { %v2855_v34 = vadd.f32 %v2001_v53, %v1136_v20 }
 0x26c   : > { %v2817_v40 = vpop.f32.mrb[10].mxu0  ;;  %2158 = vxpose.xlu1.b32.cont [4/16] (narrow) %v2850_v13, 8  ;;  %v2664_v47 = vpop.f32.mrb[8].mxu1 }
 0x26d   : > { %v2856_v54 = vadd.f32 %v2814_v62, %v2664_v47  ;;  %v1150_v61 = vpop.f32.mrb[9].mxu1  ;;  %v2025_v4 = vpop.f32.mrb[11].mxu0 }
 0x26e   : > { %v2857_v16 = vadd.f32 %v2013_v26, %v1150_v61 }
 0x270   : > { %v2820_v25 = vpop.f32.mrb[12].mxu0  ;;  %2159 = vxpose.xlu1.b32.cont [5/16] (narrow) %v2853_v58, 8  ;;  %v2667_v36 = vpop.f32.mrb[10].mxu1 }
 0x271   : > { %v2858_v44 = vadd.f32 %v2817_v40, %v2667_v36  ;;  %v1164_v55 = vpop.f32.mrb[11].mxu1  ;;  %v2037_v0 = vpop.f32.mrb[13].mxu0  ;;  %v3190_v36 = vmov 0  }
 0x272   : > { %v2859_v14 = vadd.f32 %v2025_v4, %v1164_v55 }
 0x274   : > { %v2823_v27 = vpop.f32.mrb[14].mxu0  ;;  %2160 = vxpose.xlu1.b32.cont [6/16] (narrow) %v2852_v43, 8  ;;  %v2670_v41 = vpop.f32.mrb[12].mxu1 }
 0x275   : > { %v2860_v51 = vadd.f32 %v2820_v25, %v2670_v41  ;;  %v1178_v7 = vpop.f32.mrb[13].mxu1  ;;  %v2049_v22 = vpop.f32.mrb[15].mxu0  ;;  %v2219_v25 = vld [vmem:[%s3799_s2] sm:$0xf] }
 0x276   : > { %v2861_v46 = vadd.f32 %v2037_v0, %v1178_v7 }
 0x278   : > { %v2826_v18 = vpop.f32.mrb[16].mxu0  ;;  %2161 = vxpose.xlu1.b32.cont [7/16] (narrow) %v2855_v34, 8  ;;  %v2673_v30 = vpop.f32.mrb[14].mxu1 }
 0x279   : > { %v3736_v32 = vadd.f32 %v2823_v27, %v2673_v30  ;;  %v1192_v37 = vpop.f32.mrb[15].mxu1  ;;  %v2061_v50 = vpop.f32.mrb[17].mxu0 }
 0x27a   : > { %v2863_v57 = vadd.f32 %v2049_v22, %v1192_v37 }
 0x27c   : > { %v2829_v60 = vpop.f32.mrb[18].mxu0  ;;  %2162 = vxpose.xlu1.b32.cont [8/16] (narrow) %v2854_v10, 8  ;;  %v2676_v1 = vpop.f32.mrb[16].mxu1 }
 0x27d   : > { %v2864_v9 = vadd.f32 %v2826_v18, %v2676_v1  ;;  %v1206_v3 = vpop.f32.mrb[17].mxu1  ;;  %v2073_v5 = vpop.f32.mrb[19].mxu0 }
 0x27e   : > { %v2865_v11 = vadd.f32 %v2061_v50, %v1206_v3 }
 0x280   : > { %v2832_v12 = vpop.f32.mrb[20].mxu0  ;;  %2163 = vxpose.xlu1.b32.cont [9/16] (narrow) %v2857_v16, 8  ;;  %2187 = vxpose.xlu0.b32.start [1/16] (narrow) %v2865_v11, 8  ;;  %v2679_v15 = vpop.f32.mrb[18].mxu1 }
 0x281   : > { %v2866_v17 = vadd.f32 %v2829_v60, %v2679_v15  ;;  %v1220_v21 = vpop.f32.mrb[19].mxu1  ;;  %v2085_v24 = vpop.f32.mrb[21].mxu0 }
 0x282   : > { %v2867_v28 = vadd.f32 %v2073_v5, %v1220_v21 }
 0x284   : > { %v2835_v31 = vpop.f32.mrb[22].mxu0  ;;  %2164 = vxpose.xlu1.b32.cont [10/16] (narrow) %v2856_v54, 8  ;;  %2188 = vxpose.xlu0.b32.cont [2/16] (narrow) %v2864_v9, 8  ;;  %v2682_v35 = vpop.f32.mrb[20].mxu1 }
 0x285   : > { %v2868_v38 = vadd.f32 %v2832_v12, %v2682_v35  ;;  %v1234_v42 = vpop.f32.mrb[21].mxu1  ;;  %v2097_v45 = vpop.f32.mrb[23].mxu0 }
 0x286   : > { %v2869_v49 = vadd.f32 %v2085_v24, %v1234_v42 }
 0x288   : > { %v2838_v52 = vpop.f32.mrb[24].mxu0  ;;  %2165 = vxpose.xlu1.b32.cont [11/16] (narrow) %v2859_v14, 8  ;;  %2189 = vxpose.xlu0.b32.cont [3/16] (narrow) %v2867_v28, 8  ;;  %v2685_v56 = vpop.f32.mrb[22].mxu1 }
 0x289   : > { %v2870_v59 = vadd.f32 %v2835_v31, %v2685_v56  ;;  %v1248_v63 = vpop.f32.mrb[23].mxu1  ;;  %v2109_v2 = vpop.f32.mrb[25].mxu0 }
 0x28a   : > { %v2871_v8 = vadd.f32 %v2097_v45, %v1248_v63 }
 0x28c   : > { %v2841_v13 = vpop.f32.mrb[26].mxu0  ;;  %2166 = vxpose.xlu1.b32.cont [12/16] (narrow) %v2858_v44, 8  ;;  %2190 = vxpose.xlu0.b32.cont [4/16] (narrow) %v2866_v17, 8  ;;  %v2688_v19 = vpop.f32.mrb[24].mxu1 }
 0x28d   : > { %v2872_v23 = vadd.f32 %v2838_v52, %v2688_v19  ;;  %v1262_v29 = vpop.f32.mrb[25].mxu1  ;;  %v2121_v33 = vpop.f32.mrb[27].mxu0 }
 0x28e   : > { %v2873_v39 = vadd.f32 %v2109_v2, %v1262_v29 }
 0x290   : > { %v2844_v43 = vpop.f32.mrb[28].mxu0  ;;  %2167 = vxpose.xlu1.b32.cont [13/16] (narrow) %v2861_v46, 8  ;;  %2191 = vxpose.xlu0.b32.cont [5/16] (narrow) %v2869_v49, 8  ;;  %v2691_v48 = vpop.f32.mrb[26].mxu1 }
 0x291   : > { %v2874_v53 = vadd.f32 %v2841_v13, %v2691_v48  ;;  %v1276_v58 = vpop.f32.mrb[27].mxu1  ;;  %v2133_v62 = vpop.f32.mrb[29].mxu0 }
 0x292   : > { %v2875_v6 = vadd.f32 %v2121_v33, %v1276_v58 }
 0x294   : > { %v2847_v10 = vpop.f32.mrb[30].mxu0  ;;  %2168 = vxpose.xlu1.b32.cont [14/16] (narrow) %v2860_v51, 8  ;;  %2192 = vxpose.xlu0.b32.cont [6/16] (narrow) %v2868_v38, 8  ;;  %v2694_v20 = vpop.f32.mrb[28].mxu1 }
 0x295   : > { %v2876_v26 = vadd.f32 %v2844_v43, %v2694_v20  ;;  %v1290_v34 = vpop.f32.mrb[29].mxu1  ;;  %v2145_v40 = vpop.f32.mrb[31].mxu0 }
 0x296   : > { %v2877_v47 = vadd.f32 %v2133_v62, %v1290_v34 }
 0x298   : > { %2169 = vxpose.xlu1.b32.cont [15/16] (narrow) %v2863_v57, 8  ;;  %2193 = vxpose.xlu0.b32.cont [7/16] (narrow) %v2871_v8, 8  ;;  %v2697_v54 = vpop.f32.mrb[30].mxu1 }
 0x299   : > { %v2878_v61 = vadd.f32 %v2847_v10, %v2697_v54  ;;  %v1304_v4 = vpop.f32.mrb[31].mxu1 }
 0x29a   : > { %v2879_v16 = vadd.f32 %v2145_v40, %v1304_v4 }
 0x29c   : > { %2170 = vxpose.xlu1.b32.end [16/16] (narrow) %v3736_v32, 8  ;;  %2194 = vxpose.xlu0.b32.cont [8/16] (narrow) %v2870_v59, 8 }
 0x2a0   : > { %2195 = vxpose.xlu0.b32.cont [9/16] (narrow) %v2873_v39, 8 }
 0x2a4   : > { %2196 = vxpose.xlu0.b32.cont [10/16] (narrow) %v2872_v23, 8 }
 0x2a8   : > { %2197 = vxpose.xlu0.b32.cont [11/16] (narrow) %v2875_v6, 8 }
 0x2ac   : > { %2198 = vxpose.xlu0.b32.cont [12/16] (narrow) %v2874_v53, 8 }
 0x2b0   : > { %2199 = vxpose.xlu0.b32.cont [13/16] (narrow) %v2877_v47, 8 }
 0x2b4   : > { %2200 = vxpose.xlu0.b32.cont [14/16] (narrow) %v2876_v26, 8 }
 0x2b8   : > { %2201 = vxpose.xlu0.b32.cont [15/16] (narrow) %v2879_v16, 8 }
 0x2ba   : > { %3072 = vset.pattern.permute.xlu1 %v3190_v36 }
 0x2bb   : > { %2222 = vperm.xlu1 %3072, %v2219_v25  }
 0x2bc   : > { %2202 = vxpose.xlu0.b32.end [16/16] (narrow) %v2878_v61, 8 }
 0x2e0   : > { %v2171_v44 = vpop.trf.xlu1 }
 0x2e5   : > { %3073 = vset.pattern.permute.xlu0 %v3190_v36 }
 0x300   : > { %v2203_v55 = vpop.trf.xlu0 }
 0x33a   : > { %v2223_v0 = vpop.permute.xlu1 %2222 }
 0x33b   : > { %v2225_v14 = vsub.f32 %v2171_v44, %v2223_v0  ;;  %v2226_v27 = vsub.f32 %v2203_v55, %v2223_v0 }
 0x33d   : > { %v2229_v41 = vcombine.low %v2225_v14, %v2226_v27 }
 0x33f   : > { %2231 = vst [vmem:[%s204_s19] sm:$0xff] %v2229_v41 }
 0x340   : > { %3118 = shalt.err (!%p3115_p6)
}
 0x341   : > { %s3119_s5 = scalar_lea.hbm %s3748_s28, 128  ;;  %s3123_s6 = scalar_lea.hbm %s3800_s3, 256 }
 0x342   : > { %p3120_p4 = scmp.ne.s32.totalorder %s3748_s28, %s3119_s5  ;;  %p3124_p1 = scmp.lt.u32.totalorder %s3748_s28, %s3800_s3 }
 0x343   : > { %p3125_p2 = scmp.lt.u32.totalorder %s3123_s6, %s3119_s5  ;;  %p3127_p8 = scmp.lt.u32.totalorder %s3119_s5, %s3748_s28 }
 0x344   : > { %p3121_p10 = pnand %p3120_p4, %p3842_p9 }
 0x345   : > { %p3126_p5 = por %p3125_p2, %p3124_p1 }
 0x346   : > { %p3122_p12 = pneg %p3121_p10 }
 0x347   : > { %p3128_p11 = por %p3127_p8, %p3126_p5 }
 0x349   : > { %p3129_p0 = pnand %p3128_p11, %p3122_p12 }
 0x34b   : > { %3132 = shalt.err (!%p3129_p0)
}
 0x34c   : > { %3010 = dma.vmem_to_hbm [thread:$0]  (%p3842_p9), %s3750_s21, 128, %s3748_s28, %s2233_s29  }
 0x34d PF: > { %s2261_s10 = sand.u32 1, %s3167_s12   ;;  %p3843_p7 = scmp.ne.s32.totalorder %s3816_s27, 0 }
 0x34e   : > { %p3844_p13 = scmp.ge.s32.totalorder %s3187_s17, 2  ;;  %s2262_s18 = scalar_lea.sflag [#allocation4], %s2261_s10 }
 0x350   : > { %p3017_p3 = pnand %p3844_p13, %p3843_p7 }
 0x352   : > { %3162 = dma.done.wait (!%p3017_p3), %s2262_s18, 128  }
 0x353   : > { %3164 = vsyncadd (!%p3017_p3), %s2262_s18, 4294967168  ;;  %s19_s17 = sadd.s32 1, %s3187_s17   ;;  %s3845_s12 = smov %s3171_s13 }
 0x354   : > { %p16_p6 = scmp.ge.s32.totalorder %s19_s17, 4   ;;  %s3846_s13 = smov %s3175_s14 }
 0x355   : > { %s3847_s14 = smov %s3268_s26  ;;  %s3848_s15 = smov %s3183_s16 }
 0x356   : > { %s3849_s16 = smov %s3851_s20  ;;  %18 = sbr.rel (!%p16_p6) target bundleno = 6 (0x6), region = 77 }
 0x35d   :  { %2267 = vsyncpa [#allocation3], 1 }
 0x35e   :  { %2269 = vsyncpa [#allocation3 + $0x1], 1 }
 0x35f   :  { %2270 = vsyncpa [#allocation4], 1 }
 0x360   :  { %2272 = vsyncpa [#allocation4 + $0x1], 1 }

</bundles_post_ra>
